<compile_context>
chip_gen: v6e
topology: v6e:2x2x1
jax: 0.10.0
libtpu: 0.0.40
codegen_flags: <defaults>
</compile_context>

<pallas_src>
import jax
import jax.numpy as jnp
from jax import lax
from jax.experimental import pallas as pl
from jax.experimental.pallas import tpu as pltpu


def _round_up(x: int, m: int) -> int:
    return ((x + m - 1) // m) * m


def _sublane_pack(dtype) -> int:
    # rows per packed (sublane x 128-lane) tile: 8 for 32-bit, 16 for 16-bit,
    # 32 for 8-bit dtypes.
    return max(8, 32 // jnp.dtype(dtype).itemsize)


def _vmem_capacity_bytes() -> int:
    try:
        info = pltpu.get_tpu_info()
        cap = getattr(info, "vmem_capacity_bytes", None)
        if cap:
            return int(cap)
    except Exception:
        pass
    return 64 << 20  # conservative default (v7x per-TensorCore VMEM)


def _pick_tiles(D, rows, lanes, in_dtype, budget_bytes, batch):
    """Pick (TD, TR, needed_bytes): D-chunk and spatial-row tile, layout-aware."""
    itemsize = jnp.dtype(in_dtype).itemsize
    pack = _sublane_pack(in_dtype)
    lanes_p = _round_up(lanes, 128)            # Mosaic pads lanes to 128

    def tile_bytes(td, tr):
        tr_in = min(_round_up(tr, pack), _round_up(rows, pack))
        tr_out = min(_round_up(tr, 8), _round_up(rows, 8))
        # double-buffered input slab + double-buffered f32 output tile
        return 2 * td * tr_in * lanes_p * itemsize + 2 * tr_out * lanes_p * 4

    # Cap the spatial tile so B * n_r >= ~4 grid steps (v7x megacore + overlap).
    target_nr = max(1, -(-4 // max(batch, 1)))
    if rows <= pack:
        candidates = [rows]
    else:
        tr_cap = min(rows, max(pack, _round_up(-(-rows // target_nr), pack)))
        candidates = sorted({min(c, rows)
                             for c in range(pack, _round_up(tr_cap, pack) + 1, pack)})

    # Preferred path: full D per step (single sweep over each output tile).
    fitting = [c for c in candidates if tile_bytes(D, c) <= budget_bytes]
    if fitting:
        tr = max(fitting)
        if rows % tr != 0:
            # only prefer an evenly-dividing tile if it costs <= 25% tile size
            div = [c for c in fitting if rows % c == 0 and 4 * c >= 3 * tr]
            if div:
                tr = max(div)
        return D, tr, tile_bytes(D, tr)

    # Fallback: split D onto a trailing reduction grid axis.  TD must divide D
    # so no grid step ever reads out-of-range (garbage) disparity planes.
    tr_min = min(candidates)
    for td in sorted((d for d in range(1, D + 1) if D % d == 0), reverse=True):
        if tile_bytes(td, tr_min) <= budget_bytes:
            return td, tr_min, tile_bytes(td, tr_min)
    return 1, tr_min, tile_bytes(1, tr_min)


def _make_kernel(td: int, n_d: int):
    unroll = True if td <= 32 else 16

    def kernel(x_ref, o_ref):
        # x_ref: (TD, TR, L) input slab; o_ref: (TR, L) f32 output (resident
        # accumulator across the trailing "arbitrary" D-block axis).
        d_blk = pl.program_id(2)
        d0 = d_blk * td

        def body(j, a):
            w = (d0 + j).astype(jnp.float32)
            return a + x_ref[j].astype(jnp.float32) * w

        acc = lax.fori_loop(0, td, body,
                            jnp.zeros(o_ref.shape, jnp.float32),
                            unroll=unroll)

        if n_d == 1:
            o_ref[...] = acc
        else:
            @pl.when(d_blk == 0)
            def _():
                o_ref[...] = acc

            @pl.when(d_blk > 0)
            def _():
                o_ref[...] = o_ref[...] + acc

    return kernel


def disparity_regression(x: jax.Array, max_disp: int, *,
                         vmem_budget_bytes: int | None = None) -> jax.Array:
    """Pallas TPU implementation of DisparityRegression.forward.

    x: [B, max_disp, H, W] (f32 / bf16); returns float32 [B, H, W].
    """
    B, D, H, W = x.shape
    assert D == max_disp, "channel axis must equal max_disp"

    S = H * W
    if S % 128 == 0:
        rows, lanes = S // 128, 128        # lane-dense spatial view (free reshape)
    else:
        rows, lanes = H, W                 # correctness fallback: full-W lane axis
    xr = x.reshape(B, D, rows, lanes)

    itemsize = jnp.dtype(x.dtype).itemsize
    cap = _vmem_capacity_bytes()
    budget = (vmem_budget_bytes if vmem_budget_bytes is not None
              else min((cap * 3) // 8, 44 << 20))   # ~24 MiB @64 MiB, ~44 MiB @128 MiB
    TD, TR, needed = _pick_tiles(D, rows, lanes, x.dtype, budget, B)
    n_r = pl.cdiv(rows, TR)
    n_d = pl.cdiv(D, TD)

    vmem_limit = int(min(max(needed + (4 << 20), 32 << 20),
                         max(cap - (16 << 20), 32 << 20)))

    cost = pl.CostEstimate(
        flops=2 * B * D * S,
        transcendentals=0,
        bytes_accessed=B * D * S * itemsize + B * S * 4,
    )

    out = pl.pallas_call(
        _make_kernel(TD, n_d),
        out_shape=jax.ShapeDtypeStruct((B, rows, lanes), jnp.float32),
        grid_spec=pltpu.PrefetchScalarGridSpec(
            num_scalar_prefetch=0,
            grid=(B, n_r, n_d),
            in_specs=[
                # (batch squeezed, D-chunk, row tile, full lane-dense last dim)
                pl.BlockSpec((None, TD, TR, lanes), lambda b, r, d: (b, d, r, 0)),
            ],
            out_specs=pl.BlockSpec((None, TR, lanes), lambda b, r, d: (b, r, 0)),
        ),
        compiler_params=pltpu.CompilerParams(
            dimension_semantics=("parallel", "parallel", "arbitrary"),
            vmem_limit_bytes=vmem_limit,
        ),
        cost_estimate=cost,
    )(xr)
    return out.reshape(B, H, W)


def disparity_regression_ref(x: jax.Array, max_disp: int) -> jax.Array:
    disp = jnp.arange(max_disp, dtype=jnp.float32).reshape(1, max_disp, 1, 1)
    return jnp.sum(x.astype(jnp.float32) * disp, axis=1)


if __name__ == "__main__":
    key = jax.random.PRNGKey(0)
    k1, k2, k3, k4, k5 = jax.random.split(key, 5)

    # 1) primary small NCHW test; H*W = 256 -> lane-dense (rows, 128) view
    B, D, H, W = 2, 8, 16, 16
    x1 = jax.random.uniform(k1, (B, D, H, W), dtype=jnp.float32)
    out1 = jax.block_until_ready(disparity_regression(x1, D))
    ref1 = disparity_regression_ref(x1, D)
    assert out1.shape == (B, H, W)
    assert jnp.allclose(out1, ref1, atol=1e-4, rtol=1e-5), "mismatch (test 1)"

    # 2) D > 32 (fori_loop unroll=16 path), W already a multiple of 128
    x2 = jax.random.uniform(k2, (1, 40, 24, 128), dtype=jnp.float32)
    out2 = jax.block_until_ready(disparity_regression(x2, 40))
    assert jnp.allclose(out2, disparity_regression_ref(x2, 40),
                        atol=1e-3, rtol=1e-4), "mismatch (test 2)"

    # 3) odd spatial (H*W % 128 != 0): full-W lane fallback + ragged row tile
    x3 = jax.random.uniform(k3, (1, 12, 10, 20), dtype=jnp.float32)
    out3 = jax.block_until_ready(disparity_regression(x3, 12))
    assert jnp.allclose(out3, disparity_regression_ref(x3, 12),
                        atol=1e-4, rtol=1e-5), "mismatch (test 3)"

    # 4) bf16 input (16-row sublane pack), f32 accumulation / output
    x4 = jax.random.uniform(k4, (1, 64, 16, 32), dtype=jnp.float32).astype(jnp.bfloat16)
    out4 = jax.block_until_ready(disparity_regression(x4, 64))
    assert jnp.allclose(out4, disparity_regression_ref(x4, 64),
                        atol=1e-2, rtol=1e-3), "mismatch (test 4)"

    # 5) force a tiny VMEM budget to exercise the D-split reduction-grid
    #    fallback (pl.when init / accumulate into the resident output tile)
    x5 = jax.random.uniform(k5, (1, 24, 16, 128), dtype=jnp.float32)
    out5 = jax.block_until_ready(
        disparity_regression(x5, 24, vmem_budget_bytes=96 * 1024))
    assert jnp.allclose(out5, disparity_regression_ref(x5, 24),
                        atol=1e-3, rtol=1e-4), "mismatch (test 5)"

    print("KERNEL_OK")
</pallas_src>

<mosaic_0001>
module attributes {stable_mosaic.version = 11 : i64} {
  func.func @kernel(%arg0: i32, %arg1: i32, %arg2: i32, %arg3: memref<1x8x2x128xf32, #tpu.memory_space<vmem>>, %arg4: memref<1x2x128xf32, #tpu.memory_space<vmem>>) attributes {dimension_semantics = [#tpu.dimension_semantics<parallel>, #tpu.dimension_semantics<parallel>, #tpu.dimension_semantics<arbitrary>], iteration_bounds = array<i64: 2, 1, 1>, scalar_prefetch = 0 : i64, scratch_operands = 0 : i64, tpu.core_type = #tpu.core_type<tc>, window_params = [{transform_indices = @transform_0, window_bounds = array<i64: 1, 8, 2, 128>}, {transform_indices = @transform_1, window_bounds = array<i64: 1, 2, 128>}]} {
    %c8_i32 = arith.constant 8 : i32
    %0 = arith.muli %arg2, %c8_i32 : i32
    %cst = arith.constant 0.000000e+00 : f32
    %1 = vector.broadcast %cst : f32 to vector<2x128xf32>
    %c0_i32 = arith.constant 0 : i32
    %2 = arith.addi %0, %c0_i32 : i32
    %3 = arith.sitofp %2 : i32 to f32
    %c0 = arith.constant 0 : index
    %4 = arith.index_cast %c0_i32 : i32 to index
    %c0_0 = arith.constant 0 : index
    %c0_1 = arith.constant 0 : index
    %5 = vector.load %arg3[%c0, %4, %c0_0, %c0_1] : memref<1x8x2x128xf32, #tpu.memory_space<vmem>>, vector<1x1x2x128xf32>
    %6 = vector.shape_cast %5 : vector<1x1x2x128xf32> to vector<2x128xf32>
    %7 = vector.broadcast %3 : f32 to vector<2x128xf32>
    %8 = arith.mulf %6, %7 : vector<2x128xf32>
    %9 = arith.addf %1, %8 : vector<2x128xf32>
    %c1_i32 = arith.constant 1 : i32
    %10 = arith.addi %0, %c1_i32 : i32
    %11 = arith.sitofp %10 : i32 to f32
    %c0_2 = arith.constant 0 : index
    %12 = arith.index_cast %c1_i32 : i32 to index
    %c0_3 = arith.constant 0 : index
    %c0_4 = arith.constant 0 : index
    %13 = vector.load %arg3[%c0_2, %12, %c0_3, %c0_4] : memref<1x8x2x128xf32, #tpu.memory_space<vmem>>, vector<1x1x2x128xf32>
    %14 = vector.shape_cast %13 : vector<1x1x2x128xf32> to vector<2x128xf32>
    %15 = vector.broadcast %11 : f32 to vector<2x128xf32>
    %16 = arith.mulf %14, %15 : vector<2x128xf32>
    %17 = arith.addf %9, %16 : vector<2x128xf32>
    %c2_i32 = arith.constant 2 : i32
    %18 = arith.addi %0, %c2_i32 : i32
    %19 = arith.sitofp %18 : i32 to f32
    %c0_5 = arith.constant 0 : index
    %20 = arith.index_cast %c2_i32 : i32 to index
    %c0_6 = arith.constant 0 : index
    %c0_7 = arith.constant 0 : index
    %21 = vector.load %arg3[%c0_5, %20, %c0_6, %c0_7] : memref<1x8x2x128xf32, #tpu.memory_space<vmem>>, vector<1x1x2x128xf32>
    %22 = vector.shape_cast %21 : vector<1x1x2x128xf32> to vector<2x128xf32>
    %23 = vector.broadcast %19 : f32 to vector<2x128xf32>
    %24 = arith.mulf %22, %23 : vector<2x128xf32>
    %25 = arith.addf %17, %24 : vector<2x128xf32>
    %c3_i32 = arith.constant 3 : i32
    %26 = arith.addi %0, %c3_i32 : i32
    %27 = arith.sitofp %26 : i32 to f32
    %c0_8 = arith.constant 0 : index
    %28 = arith.index_cast %c3_i32 : i32 to index
    %c0_9 = arith.constant 0 : index
    %c0_10 = arith.constant 0 : index
    %29 = vector.load %arg3[%c0_8, %28, %c0_9, %c0_10] : memref<1x8x2x128xf32, #tpu.memory_space<vmem>>, vector<1x1x2x128xf32>
    %30 = vector.shape_cast %29 : vector<1x1x2x128xf32> to vector<2x128xf32>
    %31 = vector.broadcast %27 : f32 to vector<2x128xf32>
    %32 = arith.mulf %30, %31 : vector<2x128xf32>
    %33 = arith.addf %25, %32 : vector<2x128xf32>
    %c4_i32 = arith.constant 4 : i32
    %34 = arith.addi %0, %c4_i32 : i32
    %35 = arith.sitofp %34 : i32 to f32
    %c0_11 = arith.constant 0 : index
    %36 = arith.index_cast %c4_i32 : i32 to index
    %c0_12 = arith.constant 0 : index
    %c0_13 = arith.constant 0 : index
    %37 = vector.load %arg3[%c0_11, %36, %c0_12, %c0_13] : memref<1x8x2x128xf32, #tpu.memory_space<vmem>>, vector<1x1x2x128xf32>
    %38 = vector.shape_cast %37 : vector<1x1x2x128xf32> to vector<2x128xf32>
    %39 = vector.broadcast %35 : f32 to vector<2x128xf32>
    %40 = arith.mulf %38, %39 : vector<2x128xf32>
    %41 = arith.addf %33, %40 : vector<2x128xf32>
    %c5_i32 = arith.constant 5 : i32
    %42 = arith.addi %0, %c5_i32 : i32
    %43 = arith.sitofp %42 : i32 to f32
    %c0_14 = arith.constant 0 : index
    %44 = arith.index_cast %c5_i32 : i32 to index
    %c0_15 = arith.constant 0 : index
    %c0_16 = arith.constant 0 : index
    %45 = vector.load %arg3[%c0_14, %44, %c0_15, %c0_16] : memref<1x8x2x128xf32, #tpu.memory_space<vmem>>, vector<1x1x2x128xf32>
    %46 = vector.shape_cast %45 : vector<1x1x2x128xf32> to vector<2x128xf32>
    %47 = vector.broadcast %43 : f32 to vector<2x128xf32>
    %48 = arith.mulf %46, %47 : vector<2x128xf32>
    %49 = arith.addf %41, %48 : vector<2x128xf32>
    %c6_i32 = arith.constant 6 : i32
    %50 = arith.addi %0, %c6_i32 : i32
    %51 = arith.sitofp %50 : i32 to f32
    %c0_17 = arith.constant 0 : index
    %52 = arith.index_cast %c6_i32 : i32 to index
    %c0_18 = arith.constant 0 : index
    %c0_19 = arith.constant 0 : index
    %53 = vector.load %arg3[%c0_17, %52, %c0_18, %c0_19] : memref<1x8x2x128xf32, #tpu.memory_space<vmem>>, vector<1x1x2x128xf32>
    %54 = vector.shape_cast %53 : vector<1x1x2x128xf32> to vector<2x128xf32>
    %55 = vector.broadcast %51 : f32 to vector<2x128xf32>
    %56 = arith.mulf %54, %55 : vector<2x128xf32>
    %57 = arith.addf %49, %56 : vector<2x128xf32>
    %c7_i32 = arith.constant 7 : i32
    %58 = arith.addi %0, %c7_i32 : i32
    %59 = arith.sitofp %58 : i32 to f32
    %c0_20 = arith.constant 0 : index
    %60 = arith.index_cast %c7_i32 : i32 to index
    %c0_21 = arith.constant 0 : index
    %c0_22 = arith.constant 0 : index
    %61 = vector.load %arg3[%c0_20, %60, %c0_21, %c0_22] : memref<1x8x2x128xf32, #tpu.memory_space<vmem>>, vector<1x1x2x128xf32>
    %62 = vector.shape_cast %61 : vector<1x1x2x128xf32> to vector<2x128xf32>
    %63 = vector.broadcast %59 : f32 to vector<2x128xf32>
    %64 = arith.mulf %62, %63 : vector<2x128xf32>
    %65 = arith.addf %57, %64 : vector<2x128xf32>
    %c8_i32_23 = arith.constant 8 : i32
    %c0_24 = arith.constant 0 : index
    %c0_25 = arith.constant 0 : index
    %c0_26 = arith.constant 0 : index
    %66 = vector.load %arg4[%c0_24, %c0_25, %c0_26] : memref<1x2x128xf32, #tpu.memory_space<vmem>>, vector<1x2x128xf32>
    %67 = vector.shape_cast %66 : vector<1x2x128xf32> to vector<2x128xf32>
    %68 = vector.shape_cast %65 : vector<2x128xf32> to vector<1x2x128xf32>
    tpu.vector_store %arg4[%c0_24, %c0_25, %c0_26], %68 {strides = array<i32>} : memref<1x2x128xf32, #tpu.memory_space<vmem>>, vector<1x2x128xf32>,
    return
  }
  func.func @transform_0(%arg0: i32, %arg1: i32, %arg2: i32) -> (i32, i32, i32, i32) {
    %c0_i32 = arith.constant 0 : i32
    %c0_i32_0 = arith.constant 0 : i32
    return %arg0, %arg2, %arg1, %c0_i32 : i32, i32, i32, i32
  }
  func.func @transform_1(%arg0: i32, %arg1: i32, %arg2: i32) -> (i32, i32, i32) {
    %c0_i32 = arith.constant 0 : i32
    %c0_i32_0 = arith.constant 0 : i32
    return %arg0, %arg1, %c0_i32 : i32, i32, i32
  }
}

</mosaic_0001>

<bundles_post_ra>
// kernel: tpu_custom_call.1
= control target key start
LH: loop header
LB: loop body
LE: loop exit
PB: predicated region body
PF: predicated region fallthrough
CT: control target
= control target key end

     0   :  { %6 = vsyncpa [#allocation3], 0  ;;  %s664_s0 = inlined_call_operand.hbm [shape: f32[2,8,2,128], index: 0, kind: input, shape index: {}]   ;;  %s665_s1 = inlined_call_operand.hbm [shape: f32[2,2,128], index: 1, kind: output, shape index: {}]  }
   0x1   :  { %8 = vsyncpa [#allocation3 + $0x1], 0 }
   0x2   :  { %9 = vsyncpa [#allocation4], 0 }
   0x3   :  { %11 = vsyncpa [#allocation4 + $0x1], 0  ;;  %s531_s6 = smov 0   ;;  %s533_s7 = smov 0  }
   0x4   :  { %s535_s8 = smov 0   ;;  %s537_s9 = smov 0  }
   0x5   :  { %s539_s10 = smov 0   ;;  %s541_s11 = smov 0  }
   0x6 LB: > { %s321_s12 = sadd.s32 4294967295, %s515_s11   ;;  %s322_s13 = sadd.s32 4294967294, %s515_s11   ;;  %s515_s11 = sphi %s541_s11, %s17_s11   ;;  %s511_s10 = sphi %s539_s10, %s676_s10   ;;  %s507_s9 = sphi %s537_s9, %s675_s9   ;;  %s503_s8 = sphi %s535_s8, %s674_s8   ;;  %s499_s7 = sphi %s533_s7, %s673_s7   ;;  %s495_s6 = sphi %s531_s6, %s672_s6  }
   0x7   : > { %s36_s14 = sadd.s32 1, %s511_s10  ;;  %s47_s15 = sadd.s32 1, %s503_s8 }
   0x8   : > { %p38_p0 = scmp.ge.s32.totalorder %s36_s14, 2  ;;  %p54_p1 = scmp.ne.s32.totalorder %s503_s8, %s499_s7 }
   0x9   : > { %p55_p2 = scmp.eq.s32.totalorder %s515_s11, 0  ;;  %p60_p3 = scmp.ne.s32.totalorder %s499_s7, %s495_s6 }
   0xa   : > { %s678_s14 = smov (%p38_p0, %s36_s14), 0  ;;  %p61_p5 = scmp.eq.s32.totalorder %s321_s12, 0 }
   0xb   : > { %p572_p4 = por %p55_p2, %p54_p1  ;;  %s40_s17 = ssub.s32 %s511_s10, %s678_s14 }
   0xc   : > { %p86_p6 = scmp.eq.s32.totalorder %s321_s12, 1  ;;  %p45_p7 = scmp.eq.s32.totalorder %s40_s17, 0 }
   0xd   : > { %p578_p8 = por %p61_p5, %p60_p3  ;;  %p92_p10 = scmp.eq.s32.totalorder %s322_s13, 1 }
   0xe   : > { %p582_p9 = por %p86_p6, %p54_p1  ;;  %p355_p13 = scmp.lt.s32.totalorder %s515_s11, 2 }
   0xf   : > { %s587_s20 = scalar_select %p45_p7, %s503_s8, %s47_s15  }
  0x10   : > { %p589_p11 = por %p92_p10, %p60_p3  ;;  %s112_s22 = sand.u32 1, %s503_s8  }
  0x11   : > { %s325_s23 = sshll.u32 %s112_s22, 4  ;;  %s342_s24 = sshll.u32 %s511_s10, 8 }
  0x12   : > { %s125_s27 = scalar_lea.hbm %s664_s0, %s342_s24  ;;  %s116_s28 = scalar_lea.vmem [#allocation2], %s325_s23 }
  0x13   : > { %s126_s29 = sshll.u32 %s116_s28, 4  ;;  %p602_p0 = pnand %p355_p13, %p572_p4  ;;  %s127_s29 = int_to_ptr.vmem [resolvable:$true] %s126_s29 }
  0x14   : > { %p328_p1 = scmp.ge.s32.totalorder %s515_s11, 1  ;;  %s113_s2 = scalar_lea.sflag [#allocation3], %s112_s22 }
  0x15   : > { %p409_p2 = pneg %p602_p0  ;;  %s420_s3 = scalar_lea.vmem %s127_s29, 256 }
  0x16   : > { %p421_p3 = scmp.ne.s32.totalorder %s127_s29, %s420_s3  ;;  %s517_s4 = smov [#allocation2]  }
  0x17   : > { %s425_s5 = sshll.u32 %s517_s4, 4  ;;  %s426_s5 = int_to_ptr.vmem [resolvable:$false] %s425_s5 }
  0x18   : > { %p423_p5 = pnand %p421_p3, %p409_p2  ;;  %s427_s12 = scalar_lea.vmem %s426_s5, 512 }
  0x19   : > { %p428_p7 = scmp.lt.s32.totalorder %s127_s29, %s426_s5  ;;  %p429_p10 = scmp.lt.s32.totalorder %s427_s12, %s420_s3 }
  0x1a   : > { %p424_p6 = pneg %p423_p5 }
  0x1b   : > { %p430_p12 = por %p429_p10, %p428_p7 }
  0x1d   : > { %p431_p4 = pnand %p430_p12, %p424_p6 }
  0x1f   : > { %434 = shalt.err (!%p431_p4)
}
  0x20   : > { %s518_s13 = smov 32   ;;  %s519_s15 = smov 2  }
  0x21   : > { %350 = dma.hbm_to_vmem [thread:$0]  (!%p602_p0), %s125_s27, 256, %s127_s29, %s113_s2, %s518_s13, %s518_s13, %s519_s15  }
  0x22   : > { %p134_p13 = scmp.lt.s32.totalorder %s515_s11, 3 }
  0x24   : > { %p135_p2 = pnand %p328_p1, %p134_p13 }
  0x25   : > { %s615_s16 = sand.u32 (!%p135_p2), 1, %s499_s7  }
  0x26   : > { %138 = sbr.rel (%p135_p2) target bundleno = 74 (0x4a), region = 24  ;;  %s329_s17 = sshll.u32 (!%p135_p2), %s615_s16, 4 }
  0x27   : > { %s141_s22 = scalar_lea.sflag (!%p135_p2), [#allocation3], %s615_s16  ;;  %s144_s23 = scalar_lea.vmem (!%p135_p2), [#allocation2], %s329_s17 }
  0x2b   : > { %486 = dma.done.wait (%p578_p8), %s141_s22, 256  }
  0x2c   : > { %488 = vsyncadd (%p578_p8), %s141_s22, 4294967040  ;;  %v166_v0 = vld [vmem:[%s144_s23] sm:$0x3]  ;;  %v331_v1 = vld [vmem:[%s144_s23 + $0x2] sm:$0x3]  ;;  %s330_s24 = sshll.u32 %s615_s16, 1 }
  0x2d   : > { %v332_v2 = vld [vmem:[%s144_s23 + $0x4] sm:$0x3]  ;;  %v168_v3 = vmul.f32 0.0, %v166_v0  ;;  %v333_v5 = vld [vmem:[%s144_s23 + $0x6] sm:$0x3]  ;;  %s162_s18 = scalar_lea.vmem [#allocation5], %s330_s24 }
  0x2e   : > { %v182_v4 = vmul.f32 2.0, %v332_v2  ;;  %v334_v6 = vld [vmem:[%s144_s23 + $0x8] sm:$0x3]  ;;  %v189_v8 = vmul.f32 3.0, %v333_v5  ;;  %v335_v9 = vld [vmem:[%s144_s23 + $0xa] sm:$0x3] }
  0x2f   : > { %v176_v7 = vadd.f32 %v331_v1, %v168_v3  ;;  %v196_v11 = vmul.f32 4.0, %v334_v6  ;;  %v336_v12 = vld [vmem:[%s144_s23 + $0xc] sm:$0x3]  ;;  %v203_v14 = vmul.f32 5.0, %v335_v9  ;;  %v337_v15 = vld [vmem:[%s144_s23 + $0xe] sm:$0x3] }
  0x30   : > { %v210_v17 = vmul.f32 6.0, %v336_v12  ;;  %v217_v19 = vmul.f32 7.0, %v337_v15  ;;  %s235_s25 = sshll.u32 %s162_s18, 4  ;;  %s339_s26 = sshll.u32 %s507_s9, 5  ;;  %s236_s25 = int_to_ptr.vmem [resolvable:$true] %s235_s25 }
  0x31   : > { %v183_v10 = vadd.f32 %v182_v4, %v176_v7  ;;  %s233_s29 = scalar_lea.hbm %s665_s1, %s339_s26  ;;  %s221_s30 = scalar_lea.sflag [#allocation4], %s615_s16 }
  0x32   : > { %s435_s2 = scalar_lea.vmem %s236_s25, 32  ;;  %s520_s3 = smov [#allocation5]  }
  0x33   : > { %v190_v13 = vadd.f32 %v189_v8, %v183_v10  ;;  %p436_p8 = scmp.ne.s32.totalorder %s236_s25, %s435_s2  ;;  %s439_s4 = sshll.u32 %s520_s3, 4  ;;  %s440_s4 = int_to_ptr.vmem [resolvable:$false] %s439_s4 }
  0x34   : > { %s441_s5 = scalar_lea.vmem %s440_s4, 64  ;;  %p442_p1 = scmp.lt.s32.totalorder %s236_s25, %s440_s4 }
  0x35   : > { %v197_v16 = vadd.f32 %v196_v11, %v190_v13  ;;  %p437_p12 = pnand %p436_p8, %p582_p9  ;;  %p443_p3 = scmp.lt.s32.totalorder %s441_s5, %s435_s2 }
  0x37   : > { %v204_v18 = vadd.f32 %v203_v14, %v197_v16  ;;  %p438_p0 = pneg %p437_p12  ;;  %p444_p5 = por %p443_p3, %p442_p1 }
  0x39   : > { %v211_v20 = vadd.f32 %v210_v17, %v204_v18  ;;  %p445_p6 = pnand %p444_p5, %p438_p0 }
  0x3b   : > { %v218_v21 = vadd.f32 %v217_v19, %v211_v20 }
  0x3d   : > { %219 = vst [vmem:[%s162_s18] sm:$0x3] %v218_v21 }
  0x3e   : > { %448 = shalt.err (!%p445_p6)
}
  0x3f   : > { %s449_s9 = scalar_lea.hbm %s233_s29, 32  ;;  %s453_s15 = scalar_lea.hbm %s665_s1, 64 }
  0x40   : > { %p450_p7 = scmp.ne.s32.totalorder %s233_s29, %s449_s9  ;;  %p454_p13 = scmp.lt.s32.totalorder %s233_s29, %s665_s1 }
  0x41   : > { %p455_p2 = scmp.lt.s32.totalorder %s453_s15, %s449_s9 }
  0x42   : > { %p451_p10 = pnand %p450_p7, %p582_p9 }
  0x43   : > { %p456_p8 = por %p455_p2, %p454_p13 }
  0x44   : > { %p452_p4 = pneg %p451_p10 }
  0x46   : > { %p457_p12 = pnand %p456_p8, %p452_p4 }
  0x48   : > { %460 = shalt.err (!%p457_p12)
}
  0x49   : > { %345 = dma.vmem_to_hbm [thread:$0]  (%p582_p9), %s236_s25, 32, %s233_s29, %s221_s30  }
  0x4a PF: > { %s247_s22 = sand.u32 1, %s495_s6   ;;  %p671_p0 = scmp.ge.s32.totalorder %s515_s11, 2 }
  0x4b   : > { %s248_s23 = scalar_lea.sflag [#allocation4], %s247_s22 }
  0x4c   : > { %p352_p1 = pnand %p671_p0, %p589_p11 }
  0x4e   : > { %p353_p3 = pneg %p352_p1 }
  0x50   : > { %490 = dma.done.wait (%p353_p3), %s248_s23, 32  }
  0x51   : > { %492 = vsyncadd (%p353_p3), %s248_s23, 4294967264  ;;  %s17_s11 = sadd.s32 1, %s515_s11   ;;  %s672_s6 = smov %s499_s7 }
  0x52   : > { %p14_p5 = scmp.ge.s32.totalorder %s17_s11, 4   ;;  %s673_s7 = smov %s503_s8 }
  0x53   : > { %s674_s8 = smov %s587_s20  ;;  %s675_s9 = smov %s511_s10 }
  0x54   : > { %s676_s10 = smov %s678_s14  ;;  %16 = sbr.rel (!%p14_p5) target bundleno = 6 (0x6), region = 76 }
  0x59   :  { %253 = vsyncpa [#allocation3], 1 }
  0x5a   :  { %255 = vsyncpa [#allocation3 + $0x1], 1 }
  0x5b   :  { %256 = vsyncpa [#allocation4], 1 }
  0x5c   :  { %258 = vsyncpa [#allocation4 + $0x1], 1 }

</bundles_post_ra>
